<compile_context>
chip_gen: v7x
topology: tpu7x:2x2x1
jax: 0.10.0
libtpu: 0.0.40
codegen_flags: <defaults>
</compile_context>

<pallas_src>
import functools
import math

import jax
import jax.numpy as jnp
from jax.experimental import pallas as pl
from jax.experimental.pallas import tpu as pltpu


def _round_up(x, m):
    return ((x + m - 1) // m) * m


# --------------------------------------------------------------------------
# Fast path: embedding table resident in VMEM, gather via dynamic VMEM loads.
# --------------------------------------------------------------------------
def _resident_embed_kernel(ids_ref, w_ref, out_ref, *, scale, tm, unroll):
    """ids_ref: SMEM (T_pad,) int32; w_ref: VMEM (V, D); out_ref: VMEM (tm, D)."""
    base = pl.program_id(0) * tm

    @pl.loop(0, tm // unroll)
    def _group(u):
        t0 = u * unroll
        for k in range(unroll):          # unrolled for LLO scheduler visibility
            t = t0 + k
            row = ids_ref[base + t]
            out_ref[pl.ds(t, 1), :] = (
                w_ref[pl.ds(row, 1), :].astype(jnp.float32) * scale
            ).astype(out_ref.dtype)


# --------------------------------------------------------------------------
# Large-table path: HBM row gather with an in-step double-buffered DMA pipeline.
# --------------------------------------------------------------------------
def _hbm_gather_embed_kernel(ids_ref, w_hbm, out_ref, buf, sems, *,
                             scale, tm, tc, unroll):
    """ids_ref: SMEM (T_pad,) int32; w_hbm: HBM (V, D); out_ref: VMEM (tm, D).

    buf : VMEM (2, tc, D) -- double-buffered gather destination
    sems: DMA semaphores, shape (2,) -- one shared semaphore per slot
    """
    n_chunks = tm // tc
    tok0 = pl.program_id(0) * tm

    def issue_chunk(c, slot):
        cbase = tok0 + c * tc

        @pl.loop(0, tc // unroll)
        def _issue(u):
            t0 = u * unroll
            for k in range(unroll):      # unrolled descriptor issue
                t = t0 + k
                row = ids_ref[cbase + t]
                pltpu.make_async_copy(
                    w_hbm.at[pl.ds(row, 1), :],
                    buf.at[slot, pl.ds(t, 1), :],
                    sems.at[slot],
                ).start()

    def wait_chunk(slot):
        # Single aggregate wait: every row DMA of the chunk signalled the same
        # DMA semaphore (which counts bytes), so one descriptor covering the
        # whole (tc, D) slot retires all of them in a single instruction.
        pltpu.make_async_copy(buf.at[slot], buf.at[slot], sems.at[slot]).wait()

    # Prime the first chunk, then pipeline: issue c+1, wait c, scale+store c.
    issue_chunk(0, 0)

    @pl.loop(0, n_chunks)
    def _chunk(c):
        slot = c & 1

        @pl.when(c + 1 < n_chunks)
        def _prefetch_next():
            issue_chunk(c + 1, 1 - slot)

        wait_chunk(slot)
        off = pl.multiple_of(c * tc, tc)
        out_ref[pl.ds(off, tc), :] = (
            buf[slot].astype(jnp.float32) * scale
        ).astype(out_ref.dtype)


# --------------------------------------------------------------------------
# Wrapper
# --------------------------------------------------------------------------
def input_embeddings(token_ids, weight, d_model, *,
                     tokens_per_block=256,
                     chunk_tokens=128,
                     resident_table_bytes=16 * 1024 * 1024,
                     unroll=8):
    """Pallas equivalent of InputEmbeddings.forward.

    token_ids: (B, S) int32
    weight:    (vocab_size, d_model)   (nn.Embedding.weight)
    returns:   (B, S, d_model) in weight.dtype
    """
    B, S = token_ids.shape
    V, D = weight.shape
    assert D == d_model
    T = B * S
    itemsize = jnp.dtype(weight.dtype).itemsize
    table_bytes = V * D * itemsize
    scale = math.sqrt(d_model)

    # ---- token-block sizing (shared by both paths) ----
    tm = min(tokens_per_block, _round_up(T, 8))
    # Cap so the auto double-buffered (tm, D) output block stays <= ~8 MiB
    # (safe on v7x's 64 MiB physical / 32 MiB scoped VMEM per TC).
    cap = max(8, ((8 << 20) // (2 * D * itemsize)) // 8 * 8)
    tm = max(8, min(tm, cap))
    # Keep >= 2 blocks when there is enough work so both v7x TCs get blocks.
    if T > 16:
        tm = min(tm, _round_up(-(-T // 2), 8))
    tm = _round_up(tm, 8)

    use_resident = table_bytes <= resident_table_bytes

    if not use_resident:
        tc = max(8, (min(chunk_tokens, tm) // 8) * 8)
        tm = _round_up(tm, tc)
    else:
        tc = None

    T_pad = _round_up(T, tm)
    n_blocks = T_pad // tm
    unroll_eff = max(1, math.gcd(unroll, tc if tc is not None else tm))

    ids = token_ids.reshape(-1).astype(jnp.int32)
    ids = jnp.clip(ids, 0, V - 1)           # nn.Embedding would raise on OOB ids
    ids = jnp.pad(ids, (0, T_pad - T))      # padded tail gathers row 0, discarded

    # VMEM footprint estimate (assume double buffering of every operand);
    # raise the scoped limit only when needed, capped well under v7x physical.
    if use_resident:
        footprint = 2 * table_bytes + 2 * tm * D * itemsize
    else:
        footprint = 2 * tm * D * itemsize + 2 * tc * D * itemsize
    vmem_limit = None
    if footprint > 12 * 1024 * 1024:
        vmem_limit = min(48 * 1024 * 1024, footprint + (8 << 20))

    compiler_params = pltpu.CompilerParams(
        dimension_semantics=("parallel",),
        vmem_limit_bytes=vmem_limit,
    )

    if use_resident:
        kernel = functools.partial(_resident_embed_kernel,
                                   scale=scale, tm=tm, unroll=unroll_eff)
        grid_spec = pltpu.PrefetchScalarGridSpec(
            num_scalar_prefetch=1,                               # flat ids -> SMEM
            grid=(n_blocks,),
            in_specs=[
                # Whole table, constant index_map -> stays resident in VMEM.
                pl.BlockSpec((V, D), lambda i, ids_ref: (0, 0)),
            ],
            out_specs=pl.BlockSpec((tm, D), lambda i, ids_ref: (i, 0)),
        )
    else:
        kernel = functools.partial(_hbm_gather_embed_kernel,
                                   scale=scale, tm=tm, tc=tc, unroll=unroll_eff)
        grid_spec = pltpu.PrefetchScalarGridSpec(
            num_scalar_prefetch=1,                               # flat ids -> SMEM
            grid=(n_blocks,),
            in_specs=[
                pl.BlockSpec(memory_space=pl.ANY),               # table stays in HBM
            ],
            out_specs=pl.BlockSpec((tm, D), lambda i, ids_ref: (i, 0)),
            scratch_shapes=[
                pltpu.VMEM((2, tc, D), weight.dtype),            # double-buffered gather
                pltpu.SemaphoreType.DMA((2,)),                   # one shared sem per slot
            ],
        )

    out_flat = pl.pallas_call(
        kernel,
        out_shape=jax.ShapeDtypeStruct((T_pad, D), weight.dtype),
        grid_spec=grid_spec,
        compiler_params=compiler_params,
    )(ids, weight)

    return out_flat[:T].reshape(B, S, D)


if __name__ == "__main__":
    d_model = 128
    vocab_size = 1000
    batch, seq = 2, 8

    key = jax.random.PRNGKey(0)
    k_w, k_ids = jax.random.split(key)

    # nn.Embedding default init: weight ~ N(0, 1), shape (vocab_size, d_model)
    weight = jax.random.normal(k_w, (vocab_size, d_model), dtype=jnp.float32)
    token_ids = jax.random.randint(k_ids, (batch, seq), 0, vocab_size,
                                   dtype=jnp.int32)

    ref = jnp.take(weight, token_ids, axis=0) * math.sqrt(d_model)

    # Fast path: 1000x128 f32 table (512 KiB) goes VMEM-resident.
    out_resident = jax.block_until_ready(
        input_embeddings(token_ids, weight, d_model))
    assert out_resident.shape == (batch, seq, d_model)
    assert jnp.allclose(out_resident, ref, atol=1e-5, rtol=1e-5)

    # Large-table path: force the HBM manual-DMA gather pipeline and check it too.
    out_hbm = jax.block_until_ready(
        input_embeddings(token_ids, weight, d_model, resident_table_bytes=0))
    assert out_hbm.shape == (batch, seq, d_model)
    assert jnp.allclose(out_hbm, ref, atol=1e-5, rtol=1e-5)

    print("KERNEL_OK")
</pallas_src>

<mosaic_0001>
module attributes {stable_mosaic.version = 11 : i64} {
  func.func @_resident_embed_kernel(%arg0: i32, %arg1: memref<16xi32, #tpu.memory_space<smem>>, %arg2: memref<1000x128xf32, #tpu.memory_space<vmem>>, %arg3: memref<16x128xf32, #tpu.memory_space<vmem>>) attributes {dimension_semantics = [#tpu.dimension_semantics<parallel>], iteration_bounds = array<i64: 1>, scalar_prefetch = 1 : i64, scratch_operands = 0 : i64, tpu.core_type = #tpu.core_type<tc>, window_params = [{pipeline_mode = #tpu.pipeline_mode<synchronous>, transform_indices = @transform_0, window_bounds = array<i64: 1000, 128>}, {transform_indices = @transform_1, window_bounds = array<i64: 16, 128>}]} {
    %c16_i32 = arith.constant 16 : i32
    %0 = arith.muli %arg0, %c16_i32 : i32
    %c0_i32 = arith.constant 0 : i32
    %c2_i32 = arith.constant 2 : i32
    %1 = arith.addi %c0_i32, %c2_i32 : i32
    %c1_i32 = arith.constant 1 : i32
    scf.for %arg4 = %c0_i32 to %1 step %c1_i32  : i32 {
      %c1_i32_1 = arith.constant 1 : i32
      %2 = arith.muli %arg4, %c1_i32_1 : i32
      %c0_i32_2 = arith.constant 0 : i32
      %3 = arith.addi %c0_i32_2, %2 : i32
      %c8_i32 = arith.constant 8 : i32
      %4 = arith.muli %3, %c8_i32 : i32
      %c0_i32_3 = arith.constant 0 : i32
      %5 = arith.addi %4, %c0_i32_3 : i32
      %6 = arith.addi %0, %5 : i32
      %7 = arith.index_cast %6 : i32 to index
      %8 = memref.load %arg1[%7] : memref<16xi32, #tpu.memory_space<smem>>
      %9 = arith.index_cast %8 : i32 to index
      %c0 = arith.constant 0 : index
      %10 = vector.load %arg2[%9, %c0] : memref<1000x128xf32, #tpu.memory_space<vmem>>, vector<1x128xf32>
      %cst = arith.constant 11.3137083 : f32
      %11 = vector.broadcast %cst : f32 to vector<1x128xf32>
      %12 = arith.mulf %10, %11 : vector<1x128xf32>
      %13 = arith.index_cast %5 : i32 to index
      %c0_4 = arith.constant 0 : index
      %14 = vector.load %arg3[%13, %c0_4] : memref<16x128xf32, #tpu.memory_space<vmem>>, vector<1x128xf32>
      tpu.vector_store %arg3[%13, %c0_4], %12 {strides = array<i32>} : memref<16x128xf32, #tpu.memory_space<vmem>>, vector<1x128xf32>,
      %c1_i32_5 = arith.constant 1 : i32
      %15 = arith.addi %4, %c1_i32_5 : i32
      %16 = arith.addi %0, %15 : i32
      %17 = arith.index_cast %16 : i32 to index
      %18 = memref.load %arg1[%17] : memref<16xi32, #tpu.memory_space<smem>>
      %19 = arith.index_cast %18 : i32 to index
      %c0_6 = arith.constant 0 : index
      %20 = vector.load %arg2[%19, %c0_6] : memref<1000x128xf32, #tpu.memory_space<vmem>>, vector<1x128xf32>
      %cst_7 = arith.constant 11.3137083 : f32
      %21 = vector.broadcast %cst_7 : f32 to vector<1x128xf32>
      %22 = arith.mulf %20, %21 : vector<1x128xf32>
      %23 = arith.index_cast %15 : i32 to index
      %c0_8 = arith.constant 0 : index
      %24 = vector.load %arg3[%23, %c0_8] : memref<16x128xf32, #tpu.memory_space<vmem>>, vector<1x128xf32>
      tpu.vector_store %arg3[%23, %c0_8], %22 {strides = array<i32>} : memref<16x128xf32, #tpu.memory_space<vmem>>, vector<1x128xf32>,
      %c2_i32_9 = arith.constant 2 : i32
      %25 = arith.addi %4, %c2_i32_9 : i32
      %26 = arith.addi %0, %25 : i32
      %27 = arith.index_cast %26 : i32 to index
      %28 = memref.load %arg1[%27] : memref<16xi32, #tpu.memory_space<smem>>
      %29 = arith.index_cast %28 : i32 to index
      %c0_10 = arith.constant 0 : index
      %30 = vector.load %arg2[%29, %c0_10] : memref<1000x128xf32, #tpu.memory_space<vmem>>, vector<1x128xf32>
      %cst_11 = arith.constant 11.3137083 : f32
      %31 = vector.broadcast %cst_11 : f32 to vector<1x128xf32>
      %32 = arith.mulf %30, %31 : vector<1x128xf32>
      %33 = arith.index_cast %25 : i32 to index
      %c0_12 = arith.constant 0 : index
      %34 = vector.load %arg3[%33, %c0_12] : memref<16x128xf32, #tpu.memory_space<vmem>>, vector<1x128xf32>
      tpu.vector_store %arg3[%33, %c0_12], %32 {strides = array<i32>} : memref<16x128xf32, #tpu.memory_space<vmem>>, vector<1x128xf32>,
      %c3_i32 = arith.constant 3 : i32
      %35 = arith.addi %4, %c3_i32 : i32
      %36 = arith.addi %0, %35 : i32
      %37 = arith.index_cast %36 : i32 to index
      %38 = memref.load %arg1[%37] : memref<16xi32, #tpu.memory_space<smem>>
      %39 = arith.index_cast %38 : i32 to index
      %c0_13 = arith.constant 0 : index
      %40 = vector.load %arg2[%39, %c0_13] : memref<1000x128xf32, #tpu.memory_space<vmem>>, vector<1x128xf32>
      %cst_14 = arith.constant 11.3137083 : f32
      %41 = vector.broadcast %cst_14 : f32 to vector<1x128xf32>
      %42 = arith.mulf %40, %41 : vector<1x128xf32>
      %43 = arith.index_cast %35 : i32 to index
      %c0_15 = arith.constant 0 : index
      %44 = vector.load %arg3[%43, %c0_15] : memref<16x128xf32, #tpu.memory_space<vmem>>, vector<1x128xf32>
      tpu.vector_store %arg3[%43, %c0_15], %42 {strides = array<i32>} : memref<16x128xf32, #tpu.memory_space<vmem>>, vector<1x128xf32>,
      %c4_i32 = arith.constant 4 : i32
      %45 = arith.addi %4, %c4_i32 : i32
      %46 = arith.addi %0, %45 : i32
      %47 = arith.index_cast %46 : i32 to index
      %48 = memref.load %arg1[%47] : memref<16xi32, #tpu.memory_space<smem>>
      %49 = arith.index_cast %48 : i32 to index
      %c0_16 = arith.constant 0 : index
      %50 = vector.load %arg2[%49, %c0_16] : memref<1000x128xf32, #tpu.memory_space<vmem>>, vector<1x128xf32>
      %cst_17 = arith.constant 11.3137083 : f32
      %51 = vector.broadcast %cst_17 : f32 to vector<1x128xf32>
      %52 = arith.mulf %50, %51 : vector<1x128xf32>
      %53 = arith.index_cast %45 : i32 to index
      %c0_18 = arith.constant 0 : index
      %54 = vector.load %arg3[%53, %c0_18] : memref<16x128xf32, #tpu.memory_space<vmem>>, vector<1x128xf32>
      tpu.vector_store %arg3[%53, %c0_18], %52 {strides = array<i32>} : memref<16x128xf32, #tpu.memory_space<vmem>>, vector<1x128xf32>,
      %c5_i32 = arith.constant 5 : i32
      %55 = arith.addi %4, %c5_i32 : i32
      %56 = arith.addi %0, %55 : i32
      %57 = arith.index_cast %56 : i32 to index
      %58 = memref.load %arg1[%57] : memref<16xi32, #tpu.memory_space<smem>>
      %59 = arith.index_cast %58 : i32 to index
      %c0_19 = arith.constant 0 : index
      %60 = vector.load %arg2[%59, %c0_19] : memref<1000x128xf32, #tpu.memory_space<vmem>>, vector<1x128xf32>
      %cst_20 = arith.constant 11.3137083 : f32
      %61 = vector.broadcast %cst_20 : f32 to vector<1x128xf32>
      %62 = arith.mulf %60, %61 : vector<1x128xf32>
      %63 = arith.index_cast %55 : i32 to index
      %c0_21 = arith.constant 0 : index
      %64 = vector.load %arg3[%63, %c0_21] : memref<16x128xf32, #tpu.memory_space<vmem>>, vector<1x128xf32>
      tpu.vector_store %arg3[%63, %c0_21], %62 {strides = array<i32>} : memref<16x128xf32, #tpu.memory_space<vmem>>, vector<1x128xf32>,
      %c6_i32 = arith.constant 6 : i32
      %65 = arith.addi %4, %c6_i32 : i32
      %66 = arith.addi %0, %65 : i32
      %67 = arith.index_cast %66 : i32 to index
      %68 = memref.load %arg1[%67] : memref<16xi32, #tpu.memory_space<smem>>
      %69 = arith.index_cast %68 : i32 to index
      %c0_22 = arith.constant 0 : index
      %70 = vector.load %arg2[%69, %c0_22] : memref<1000x128xf32, #tpu.memory_space<vmem>>, vector<1x128xf32>
      %cst_23 = arith.constant 11.3137083 : f32
      %71 = vector.broadcast %cst_23 : f32 to vector<1x128xf32>
      %72 = arith.mulf %70, %71 : vector<1x128xf32>
      %73 = arith.index_cast %65 : i32 to index
      %c0_24 = arith.constant 0 : index
      %74 = vector.load %arg3[%73, %c0_24] : memref<16x128xf32, #tpu.memory_space<vmem>>, vector<1x128xf32>
      tpu.vector_store %arg3[%73, %c0_24], %72 {strides = array<i32>} : memref<16x128xf32, #tpu.memory_space<vmem>>, vector<1x128xf32>,
      %c7_i32 = arith.constant 7 : i32
      %75 = arith.addi %4, %c7_i32 : i32
      %76 = arith.addi %0, %75 : i32
      %77 = arith.index_cast %76 : i32 to index
      %78 = memref.load %arg1[%77] : memref<16xi32, #tpu.memory_space<smem>>
      %79 = arith.index_cast %78 : i32 to index
      %c0_25 = arith.constant 0 : index
      %80 = vector.load %arg2[%79, %c0_25] : memref<1000x128xf32, #tpu.memory_space<vmem>>, vector<1x128xf32>
      %cst_26 = arith.constant 11.3137083 : f32
      %81 = vector.broadcast %cst_26 : f32 to vector<1x128xf32>
      %82 = arith.mulf %80, %81 : vector<1x128xf32>
      %83 = arith.index_cast %75 : i32 to index
      %c0_27 = arith.constant 0 : index
      %84 = vector.load %arg3[%83, %c0_27] : memref<16x128xf32, #tpu.memory_space<vmem>>, vector<1x128xf32>
      tpu.vector_store %arg3[%83, %c0_27], %82 {strides = array<i32>} : memref<16x128xf32, #tpu.memory_space<vmem>>, vector<1x128xf32>,
    }
    %c2_i32_0 = arith.constant 2 : i32
    return
  }
  func.func @transform_0(%arg0: i32, %arg1: memref<16xi32, #tpu.memory_space<smem>>) -> (i32, i32) {
    %c0_i32 = arith.constant 0 : i32
    %c0_i32_0 = arith.constant 0 : i32
    %c0_i32_1 = arith.constant 0 : i32
    return %c0_i32, %c0_i32_0 : i32, i32
  }
  func.func @transform_1(%arg0: i32, %arg1: memref<16xi32, #tpu.memory_space<smem>>) -> (i32, i32) {
    %c0_i32 = arith.constant 0 : i32
    %c0_i32_0 = arith.constant 0 : i32
    return %arg0, %c0_i32 : i32, i32
  }
}

</mosaic_0001>

<bundles_post_ra>
// kernel: tpu_custom_call.1
= control target key start
LH: loop header
LB: loop body
LE: loop exit
PB: predicated region body
PF: predicated region fallthrough
CT: control target
= control target key end

     0   :  { %s319_s0 = inlined_call_operand.hbm [shape: s32[16], index: 0, kind: input, shape index: {}]   ;;  %s320_s1 = inlined_call_operand.hbm [shape: f32[1000,128], index: 1, kind: input, shape index: {}]   ;;  %s321_s2 = inlined_call_operand.hbm [shape: f32[16,128], index: 2, kind: output, shape index: {}]  }
   0x1   :  { %s180_s11 = scalar_lea.hbm %s319_s0, 16 }
   0x2   :  { %p181_p0 = scmp.ne.s32.totalorder %s319_s0, %s180_s11  ;;  %p184_p1 = scmp.lt.u32.totalorder %s180_s11, %s319_s0 }
   0x4   :  { %p186_p2 = pnand %p184_p1, %p181_p0 }
   0x6   :  { %189 = shalt.err (!%p186_p2)  }
   0x7   :  { %s248_s16 = smov [#allocation3]  }
   0x8   :  { %8 = dma.hbm_to_smem %s319_s0, 16, %s248_s16, [#allocation2] }
   0x9   :  { %238 = dma.done.wait [#allocation2], 16 }
   0xa   :  { %239 = vsyncadd [#allocation2], 4294967280 }
   0xb   :  { %10 = sfence }
   0xc   :  { %11 = vsyncpa [#allocation5], 0 }
   0xd   :  { %12 = vsyncpa [#allocation6], 0  ;;  %s249_s19 = smov [#allocation4]   ;;  %s190_s23 = scalar_lea.hbm %s320_s1, 16000 }
   0xe   :  { %s18_s20 = sshll.u32 %s249_s19, 4  ;;  %p191_p3 = scmp.ne.s32.totalorder %s320_s1, %s190_s23  ;;  %s19_s20 = int_to_ptr.vmem [resolvable:$true] %s18_s20 }
   0xf   :  { %p194_p4 = scmp.lt.u32.totalorder %s190_s23, %s320_s1 }
  0x11   :  { %p196_p5 = pnand %p194_p4, %p191_p3 }
  0x13   :  { %199 = shalt.err (!%p196_p5)
}
  0x14   :  { %s200_s0 = scalar_lea.vmem %s19_s20, 16000  ;;  %p205_p7 = scmp.lt.s32.totalorder %s19_s20, %s19_s20 }
  0x15   :  { %p201_p6 = scmp.ne.s32.totalorder %s19_s20, %s200_s0  ;;  %p206_p8 = scmp.lt.s32.totalorder %s200_s0, %s200_s0 }
  0x17   :  { %p207_p9 = por %p206_p8, %p205_p7 }
  0x19   :  { %p208_p10 = pnand %p207_p9, %p201_p6 }
  0x1b   :  { %211 = shalt.err (!%p208_p10)
}
  0x1c   :  { %s250_s28 = smov 128   ;;  %s251_s29 = smov 8  }
  0x1d   :  { %24 = dma.hbm_to_vmem [thread:$0]  %s320_s1, 16000, %s19_s20, [#allocation5], %s250_s28, %s250_s28, %s251_s29  }
  0x1e   :  { %240 = dma.done.wait [#allocation5], 16000  }
  0x1f   :  { %241 = vsyncadd [#allocation5], 4294951296  ;;  %s295_s4 = smov 0  }
  0x20 LB: > { %s152_s5 = sshll.u32 %s246_s4, 3  ;;  %s34_s4 = sadd.s32 1, %s246_s4   ;;  %s246_s4 = sphi %s295_s4, %s34_s4  }
  0x21   : > { %s37_s6 = sld [smem:[#allocation3 + %s152_s5]]  ;;  %s43_s7 = sadd.s32 1, %s152_s5 }
  0x22   : > { %s51_s8 = sadd.s32 2, %s152_s5  ;;  %s45_s9 = sld [smem:[#allocation3 + %s43_s7]] }
  0x23   : > { %s53_s10 = sld [smem:[#allocation3 + %s51_s8]]  ;;  %s59_s11 = sadd.s32 3, %s152_s5 }
  0x24   : > { %s67_s12 = sadd.s32 4, %s152_s5  ;;  %s61_s13 = sld [smem:[#allocation3 + %s59_s11]] }
  0x25   : > { %s69_s1 = sld [smem:[#allocation3 + %s67_s12]]  ;;  %s75_s14 = sadd.s32 5, %s152_s5 }
  0x26   : > { %s83_s15 = sadd.s32 6, %s152_s5  ;;  %s77_s16 = sld [smem:[#allocation3 + %s75_s14]] }
  0x27   : > { %s38_s17 = scalar_lea.vmem [#allocation4], %s37_s6  ;;  %s85_s18 = sld [smem:[#allocation3 + %s83_s15]] }
  0x28   : > { %v39_v0 = vld [vmem:[%s38_s17] sm:$0x1]  ;;  %s91_s19 = sadd.s32 7, %s152_s5  ;;  %s46_s20 = scalar_lea.vmem [#allocation4], %s45_s9 }
  0x29   : > { %v40_v1 = vmul.f32 11.313708, %v39_v0  ;;  %v47_v2 = vld [vmem:[%s46_s20] sm:$0x1]  ;;  %s54_s21 = scalar_lea.vmem [#allocation4], %s53_s10  ;;  %s93_s22 = sld [smem:[#allocation3 + %s91_s19]] }
  0x2a   : > { %v55_v3 = vld [vmem:[%s54_s21] sm:$0x1]  ;;  %s41_s23 = scalar_lea.vmem [#allocation7], %s152_s5  ;;  %v48_v4 = vmul.f32 11.313708, %v47_v2  ;;  %s62_s24 = scalar_lea.vmem [#allocation4], %s61_s13 }
  0x2b   : > { %42 = vst [vmem:[%s41_s23] sm:$0x1] %v40_v1  ;;  %v56_v5 = vmul.f32 11.313708, %v55_v3  ;;  %v63_v6 = vld [vmem:[%s62_s24] sm:$0x1]  ;;  %s70_s25 = scalar_lea.vmem [#allocation4], %s69_s1 }
  0x2c   : > { %v71_v7 = vld [vmem:[%s70_s25] sm:$0x1]  ;;  %154 = vst [vmem:[%s41_s23 + $0x1] sm:$0x1] %v48_v4  ;;  %v64_v8 = vmul.f32 11.313708, %v63_v6 }
  0x2d   : > { %156 = vst [vmem:[%s41_s23 + $0x2] sm:$0x1] %v56_v5  ;;  %v72_v9 = vmul.f32 11.313708, %v71_v7  ;;  %s78_s26 = scalar_lea.vmem [#allocation4], %s77_s16  ;;  %s86_s27 = scalar_lea.vmem [#allocation4], %s85_s18 }
  0x2e   : > { %v79_v10 = vld [vmem:[%s78_s26] sm:$0x1]  ;;  %158 = vst [vmem:[%s41_s23 + $0x3] sm:$0x1] %v64_v8  ;;  %p31_p11 = scmp.ge.s32.totalorder %s34_s4, 2  }
  0x2f   : > { %160 = vst [vmem:[%s41_s23 + $0x4] sm:$0x1] %v72_v9  ;;  %v80_v11 = vmul.f32 11.313708, %v79_v10  ;;  %v87_v12 = vld [vmem:[%s86_s27] sm:$0x1] }
  0x30   : > { %v88_v13 = vmul.f32 11.313708, %v87_v12  ;;  %s94_s0 = scalar_lea.vmem [#allocation4], %s93_s22  ;;  %33 = sbr.rel (!%p31_p11) target bundleno = 32 (0x20), region = 51 }
  0x31   : > { %162 = vst [vmem:[%s41_s23 + $0x5] sm:$0x1] %v80_v11  ;;  %v95_v14 = vld [vmem:[%s94_s0] sm:$0x1]  ;;  %s252_s30 = smov (%p31_p11), [#allocation7]  }
  0x32   : > { %164 = vst [vmem:[%s41_s23 + $0x6] sm:$0x1] %v88_v13  ;;  %v96_v15 = vmul.f32 11.313708, %v95_v14  ;;  %s104_s3 = sshll.u32 (%p31_p11), %s252_s30, 4  ;;  %s105_s3 = int_to_ptr.vmem [resolvable:$true] %s104_s3 }
  0x33   :  { %s212_s5 = scalar_lea.vmem (%p31_p11), %s105_s3, 256  ;;  %p217_p13 = scmp.lt.s32.totalorder (%p31_p11), %s105_s3, %s105_s3 }
  0x34   : > { %166 = vst [vmem:[%s41_s23 + $0x7] sm:$0x1] %v96_v15  ;;  %p213_p12 = scmp.ne.s32.totalorder (%p31_p11), %s105_s3, %s212_s5  ;;  %p218_p0 = scmp.lt.s32.totalorder (%p31_p11), %s212_s5, %s212_s5 }
  0x36   :  { %p219_p1 = por (%p31_p11), %p218_p0, %p217_p13 }
  0x38   :  { %p220_p2 = pnand %p219_p1, %p213_p12 }
  0x3a   :  { %223 = shalt.err (!%p220_p2)
}
  0x3b   :  { %s224_s8 = scalar_lea.hbm %s321_s2, 256 }
  0x3c   :  { %p225_p3 = scmp.ne.s32.totalorder %s321_s2, %s224_s8  ;;  %p228_p4 = scmp.lt.u32.totalorder %s224_s8, %s321_s2 }
  0x3e   :  { %p230_p5 = pnand %p228_p4, %p225_p3 }
  0x40   :  { %233 = shalt.err (!%p230_p5)
}
  0x41   :  { %110 = dma.vmem_to_hbm [thread:$0]  %s105_s3, 256, %s321_s2, [#allocation6], %s250_s28, %s250_s28, %s251_s29  }
  0x42   :  { %242 = dma.done.wait [#allocation6], 256  }
  0x43   :  { %243 = vsyncadd [#allocation6], 4294967040 }
  0x44   :  { %114 = vsyncpa [#allocation5], 1 }
  0x45   :  { %115 = vsyncpa [#allocation6], 1 }

</bundles_post_ra>
